<compile_context>
chip_gen: v7x
topology: tpu7x:2x2x1
jax: 0.10.0
libtpu: 0.0.40
codegen_flags: <defaults>
</compile_context>

<pallas_src>
import math
import functools

import jax
import jax.numpy as jnp
from jax import lax
from jax.experimental import pallas as pl
from jax.experimental.pallas import tpu as pltpu

_VMEM_LIMIT = 40 * 1024 * 1024  # leave headroom out of v7x's 64 MiB physical VMEM


def _round_up(x, m):
    return ((x + m - 1) // m) * m


def _tile_and_pad(dim, target, align):
    """Return (tile, padded_dim).

    Either the block is the full (unpadded) dim (always legal), an aligned
    divisor of the dim, or — hardened fallback — an aligned tile of a
    zero-padded dim, so a pathological shape can never produce a full-array
    block that blows the VMEM limit.
    """
    if dim <= target:
        return dim, dim
    t = (target // align) * align
    tt = t
    while tt >= align:
        if dim % tt == 0:
            return tt, dim
        tt -= align
    return t, _round_up(dim, t)


def _mxu(x):
    """Cast f32 operands to bf16 for the MXU fast path (f32 accumulation kept)."""
    return x.astype(jnp.bfloat16) if x.dtype == jnp.float32 else x


# ----------------------------------------------------------------------------
# Kernel 1: tiled dense layer  out = x @ W + b  (W already (K, N))
# ----------------------------------------------------------------------------
def _linear_kernel(x_ref, wt_ref, b_ref, o_ref, acc_ref):
    k = pl.program_id(2)

    @pl.when(k == 0)
    def _():
        acc_ref[...] = jnp.zeros_like(acc_ref)

    # bf16 operands, f32 accumulation on the MXU.
    acc_ref[...] += jnp.dot(_mxu(x_ref[...]), _mxu(wt_ref[...]),
                            preferred_element_type=jnp.float32)

    @pl.when(k == pl.num_programs(2) - 1)
    def _():
        o_ref[...] = (acc_ref[...] + b_ref[...].astype(jnp.float32)
                      ).astype(o_ref.dtype)


def linear(x2d, w_t, b2d, *, tm=512, tn=512, tk=1024):
    """x2d: (M, K); w_t: (K, N); b2d: (1, N) -> (M, N)."""
    M, K = x2d.shape
    K2, N = w_t.shape
    assert K == K2

    tm, Mp = _tile_and_pad(M, tm, 8)      # sublane-aligned
    tn, Np = _tile_and_pad(N, tn, 128)    # lane-aligned
    tk, Kp = _tile_and_pad(K, tk, 128)

    # Zero-pad awkward shapes instead of falling back to full-array blocks.
    if (Mp, Kp) != (M, K):
        x2d = jnp.pad(x2d, ((0, Mp - M), (0, Kp - K)))
    if (Kp, Np) != (K, N):
        w_t = jnp.pad(w_t, ((0, Kp - K), (0, Np - N)))
    if Np != N:
        b2d = jnp.pad(b2d, ((0, 0), (0, Np - N)))

    grid = (Mp // tm, Np // tn, Kp // tk)

    itemsize = jnp.dtype(x2d.dtype).itemsize
    cost = pl.CostEstimate(
        flops=2 * Mp * Np * Kp,
        transcendentals=0,
        bytes_accessed=(Mp * Kp + Kp * Np + Mp * Np + Np) * itemsize,
    )
    out = pl.pallas_call(
        _linear_kernel,
        out_shape=jax.ShapeDtypeStruct((Mp, Np), x2d.dtype),
        grid_spec=pltpu.PrefetchScalarGridSpec(
            num_scalar_prefetch=0,
            grid=grid,
            in_specs=[
                pl.BlockSpec((tm, tk), lambda i, j, k: (i, k)),
                pl.BlockSpec((tk, tn), lambda i, j, k: (k, j)),
                pl.BlockSpec((1, tn), lambda i, j, k: (0, j)),
            ],
            out_specs=pl.BlockSpec((tm, tn), lambda i, j, k: (i, j)),
            scratch_shapes=[pltpu.VMEM((tm, tn), jnp.float32)],
        ),
        compiler_params=pltpu.CompilerParams(
            dimension_semantics=("parallel", "parallel", "arbitrary"),
            vmem_limit_bytes=_VMEM_LIMIT,
        ),
        cost_estimate=cost,
    )(x2d, w_t, b2d)
    if (Mp, Np) != (M, N):
        out = out[:M, :N]
    return out


# ----------------------------------------------------------------------------
# Kernel 2: scaled dot-product attention, tiled over (batch, q-tile); heads
# kept folded into the lane dimension (no wrapper transposes).
# K/V blocks are indexed only by the batch axis, so they stay resident across
# the q-tile axis without re-DMA.
# ----------------------------------------------------------------------------
def _sdpa_kernel(q_ref, k_ref, v_ref, x_ref, p_ref, *, heads, d_k):
    # q_ref/x_ref: (1, tq, H*d_k); k_ref/v_ref: (1, Sk, H*d_k)
    # p_ref: (1, H, tq, Sk)
    q_all = q_ref[0]                 # scale already folded into wq at init
    k_all = _mxu(k_ref[0])
    v_all = _mxu(v_ref[0])
    outs, probs = [], []
    for h in range(heads):           # static unroll; tq keeps temporaries small
        sl = slice(h * d_k, (h + 1) * d_k)
        qh = _mxu(q_all[:, sl])
        kh = k_all[:, sl]
        vh = v_all[:, sl]
        # q @ k^T without materializing k.T: contract the last axes directly.
        scores = lax.dot_general(qh, kh, (((1,), (1,)), ((), ())),
                                 preferred_element_type=jnp.float32)  # (tq, Sk)
        m = jnp.max(scores, axis=-1, keepdims=True)
        e = jnp.exp(scores - m)
        denom = jnp.sum(e, axis=-1, keepdims=True)
        p = e * pl.reciprocal(denom, approx=True)                     # EUP slot
        probs.append(p.astype(p_ref.dtype))
        outs.append(jnp.dot(_mxu(p), vh, preferred_element_type=jnp.float32))
    # Single lane-dense slab stores (avoids per-head masked partial-lane vst).
    x_ref[0] = jnp.concatenate(outs, axis=-1).astype(x_ref.dtype)
    p_ref[0] = jnp.stack(probs, axis=0)
    # TODO(synk): flash-style online softmax over Sk when the caller does not
    # need the full attention matrix; the module's API returns p_attn, so the
    # (H, tq, Sk) block is materialized here.


def _sdpa_q_tile(Sq, Sk, heads, A, itemsize, budget=32 * 1024 * 1024):
    """Largest q-tile (multiple of 8, <=256) whose VMEM footprint fits budget."""
    # Double-buffered q/x/p blocks per q-row + f32 score temporaries.
    per_row = 2 * (2 * A * itemsize + heads * Sk * itemsize) + 2 * heads * Sk * 4
    fixed = 2 * 2 * Sk * A * itemsize            # double-buffered resident K/V
    tq = min(256, max(8, ((budget - fixed) // max(per_row, 1)) // 8 * 8))
    if Sq <= tq:
        return Sq, Sq                            # full-extent block: always legal
    return tq, _round_up(Sq, tq)


def sdpa(q, k, v, heads):
    """q: (B, Sq, A), k/v: (B, Sk, A), A = heads*d_k.
    Returns x: (B, Sq, A), p_attn: (B, heads, Sq, Sk)."""
    B, Sq, A = q.shape
    _, Sk, _ = k.shape
    d_k = A // heads
    itemsize = jnp.dtype(q.dtype).itemsize

    tq, Sq_pad = _sdpa_q_tile(Sq, Sk, heads, A, itemsize)
    if Sq_pad != Sq:
        q = jnp.pad(q, ((0, 0), (0, Sq_pad - Sq), (0, 0)))
    grid = (B, Sq_pad // tq)

    kernel = functools.partial(_sdpa_kernel, heads=heads, d_k=d_k)
    cost = pl.CostEstimate(
        flops=4 * B * heads * Sq_pad * Sk * d_k,
        transcendentals=B * heads * Sq_pad * Sk,
        bytes_accessed=(2 * B * Sq_pad * A + 2 * B * Sk * A
                        + B * heads * Sq_pad * Sk) * itemsize,
    )
    x, p = pl.pallas_call(
        kernel,
        out_shape=(
            jax.ShapeDtypeStruct((B, Sq_pad, A), q.dtype),
            # p_attn kept in the input dtype for fidelity to the module.
            jax.ShapeDtypeStruct((B, heads, Sq_pad, Sk), q.dtype),
        ),
        grid_spec=pltpu.PrefetchScalarGridSpec(
            num_scalar_prefetch=0,
            grid=grid,
            in_specs=[
                pl.BlockSpec((1, tq, A), lambda b, qi: (b, qi, 0)),
                pl.BlockSpec((1, Sk, A), lambda b, qi: (b, 0, 0)),   # resident
                pl.BlockSpec((1, Sk, A), lambda b, qi: (b, 0, 0)),   # resident
            ],
            out_specs=(
                pl.BlockSpec((1, tq, A), lambda b, qi: (b, qi, 0)),
                pl.BlockSpec((1, heads, tq, Sk), lambda b, qi: (b, 0, qi, 0)),
            ),
        ),
        compiler_params=pltpu.CompilerParams(
            dimension_semantics=("parallel", "parallel"),
            vmem_limit_bytes=_VMEM_LIMIT,
        ),
        cost_estimate=cost,
    )(q, k, v)
    if Sq_pad != Sq:
        x = x[:, :Sq]
        p = p[:, :, :Sq]
    return x, p


# ----------------------------------------------------------------------------
# Parameters (PyTorch nn.Linear init), weights pre-transposed once at init,
# softmax scale folded into wq/bq, Q/K/V weights fused when input sizes match.
# ----------------------------------------------------------------------------
class AttentionParams:
    def __init__(self, heads, attn_size, query_size, key_size, value_size, key,
                 dropout=0.0):
        assert attn_size % heads == 0
        self.h = heads
        self.d_k = attn_size // heads
        self.dropout = dropout  # TODO(synk): training-mode dropout not implemented
        ks = jax.random.split(key, 8)

        def init_linear(kw, kb, in_f, out_f):
            # PyTorch nn.Linear default init: U(-1/sqrt(in_f), 1/sqrt(in_f)).
            # Stored as (in_f, out_f) so kernels compute x @ W with no
            # per-forward transpose; bias stored as (1, out_f).
            bound = 1.0 / math.sqrt(in_f)
            w_t = jax.random.uniform(kw, (in_f, out_f), jnp.float32, -bound, bound)
            b = jax.random.uniform(kb, (1, out_f), jnp.float32, -bound, bound)
            return w_t, b

        self.wq, self.bq = init_linear(ks[0], ks[1], query_size, attn_size)
        self.wk, self.bk = init_linear(ks[2], ks[3], key_size, attn_size)
        self.wv, self.bv = init_linear(ks[4], ks[5], value_size, attn_size)
        self.wo, self.bo = init_linear(ks[6], ks[7], attn_size, attn_size)

        # Fold the 1/sqrt(d_k) softmax scale into the query projection (exact
        # numerics at init time, removes a per-head VPU pass in the kernel).
        scale = 1.0 / math.sqrt(self.d_k)
        self.wq = self.wq * scale
        self.bq = self.bq * scale

        # Fused QKV projection for the self-attention (query is key is value) path.
        if query_size == key_size == value_size:
            self.w_qkv = jnp.concatenate([self.wq, self.wk, self.wv], axis=1)
            self.b_qkv = jnp.concatenate([self.bq, self.bk, self.bv], axis=1)
        else:
            self.w_qkv = None
            self.b_qkv = None


# ----------------------------------------------------------------------------
# Full Attention forward (glue in plain JAX, hot paths in Pallas)
# ----------------------------------------------------------------------------
def attention_forward(params, query, key, value):
    """query: (B, Sq, Nq), key: (B, Sk, Nk), value: (B, Sk, Nv)."""
    # TODO(synk): training-mode dropout on attention probs and the optional
    # boolean mask are not implemented (eval / mask=None path only).
    B, Sq, _ = query.shape
    _, Sk, _ = key.shape
    h, d_k = params.h, params.d_k
    attn_size = h * d_k

    # Projections keep the (B, S, H*d_k) layout; head split/merge is folded
    # into the SDPA kernel (no XLA transposes, no extra HBM round trips).
    if (query is key) and (key is value) and params.w_qkv is not None:
        # Self-attention: one fused (K, 3A) matmul — activations read once.
        qkv = linear(query.reshape(B * Sq, -1), params.w_qkv, params.b_qkv)
        q = qkv[:, :attn_size].reshape(B, Sq, attn_size)
        k = qkv[:, attn_size:2 * attn_size].reshape(B, Sq, attn_size)
        v = qkv[:, 2 * attn_size:].reshape(B, Sq, attn_size)
    else:
        q = linear(query.reshape(B * Sq, -1), params.wq, params.bq
                   ).reshape(B, Sq, attn_size)
        k = linear(key.reshape(B * Sk, -1), params.wk, params.bk
                   ).reshape(B, Sk, attn_size)
        v = linear(value.reshape(B * Sk, -1), params.wv, params.bv
                   ).reshape(B, Sk, attn_size)

    x, attn = sdpa(q, k, v, h)                     # (B,Sq,attn), (B,h,Sq,Sk)

    out = linear(x.reshape(B * Sq, attn_size), params.wo, params.bo)
    return out.reshape(B, Sq, attn_size), attn


# ----------------------------------------------------------------------------
# Pure-JAX reference for sanity checking (f32 throughout)
# ----------------------------------------------------------------------------
def reference_forward(params, query, key, value):
    B, Sq, _ = query.shape
    _, Sk, _ = key.shape
    h, d_k = params.h, params.d_k

    def proj(x, w_t, b, S):
        y = x @ w_t + b
        return y.reshape(B, S, h, d_k).transpose(0, 2, 1, 3)

    q = proj(query, params.wq, params.bq, Sq)   # wq/bq already carry 1/sqrt(d_k)
    k = proj(key, params.wk, params.bk, Sk)
    v = proj(value, params.wv, params.bv, Sk)
    scores = jnp.einsum("bhqd,bhkd->bhqk", q, k)   # no extra /sqrt(d_k): folded in
    p = jax.nn.softmax(scores, axis=-1)
    x = jnp.einsum("bhqk,bhkd->bhqd", p, v)
    x = x.transpose(0, 2, 1, 3).reshape(B, Sq, h * d_k)
    return x @ params.wo + params.bo, p


if __name__ == "__main__":
    B, S = 2, 8
    heads, attn_size = 4, 32
    query_size = key_size = value_size = 32

    root = jax.random.PRNGKey(0)
    kp, kq, kk, kv = jax.random.split(root, 4)
    params = AttentionParams(heads, attn_size, query_size, key_size, value_size,
                             kp, dropout=0.0)

    # Tolerances account for bf16 MXU operands (f32 accumulation) and the EUP
    # approximate reciprocal in the softmax.
    ATOL = RTOL = 3e-2

    # --- Test 1: self-attention (exercises the fused QKV projection path) ----
    x_in = jax.random.normal(kq, (B, S, query_size), jnp.float32)
    out, attn = attention_forward(params, x_in, x_in, x_in)
    out, attn = jax.block_until_ready(out), jax.block_until_ready(attn)
    ref_out, ref_attn = reference_forward(params, x_in, x_in, x_in)
    assert out.shape == (B, S, attn_size)
    assert attn.shape == (B, heads, S, S)
    assert jnp.allclose(out, ref_out, atol=ATOL, rtol=RTOL)
    assert jnp.allclose(attn, ref_attn, atol=ATOL, rtol=RTOL)

    # --- Test 2: cross-attention (separate projections, Sq != Sk) ------------
    Skv = 16
    query = jax.random.normal(kq, (B, S, query_size), jnp.float32)
    key = jax.random.normal(kk, (B, Skv, key_size), jnp.float32)
    value = jax.random.normal(kv, (B, Skv, value_size), jnp.float32)
    out, attn = attention_forward(params, query, key, value)
    out, attn = jax.block_until_ready(out), jax.block_until_ready(attn)
    ref_out, ref_attn = reference_forward(params, query, key, value)
    assert out.shape == (B, S, attn_size)
    assert attn.shape == (B, heads, S, Skv)
    assert jnp.allclose(out, ref_out, atol=ATOL, rtol=RTOL)
    assert jnp.allclose(attn, ref_attn, atol=ATOL, rtol=RTOL)

    print("KERNEL_OK")
</pallas_src>

<mosaic_0001>
module attributes {stable_mosaic.version = 11 : i64} {
  func.func @_linear_kernel(%arg0: i32, %arg1: i32, %arg2: i32, %arg3: memref<16x32xf32, #tpu.memory_space<vmem>>, %arg4: memref<32x96xf32, #tpu.memory_space<vmem>>, %arg5: memref<1x96xf32, #tpu.memory_space<vmem>>, %arg6: memref<16x96xf32, #tpu.memory_space<vmem>>, %arg7: memref<16x96xf32, #tpu.memory_space<vmem>>) attributes {dimension_semantics = [#tpu.dimension_semantics<parallel>, #tpu.dimension_semantics<parallel>, #tpu.dimension_semantics<arbitrary>], iteration_bounds = array<i64: 1, 1, 1>, scalar_prefetch = 0 : i64, scratch_operands = 1 : i64, tpu.core_type = #tpu.core_type<tc>, window_params = [{transform_indices = @transform_0, window_bounds = array<i64: 16, 32>}, {transform_indices = @transform_1, window_bounds = array<i64: 32, 96>}, {transform_indices = @transform_2, window_bounds = array<i64: 1, 96>}, {transform_indices = @transform_3, window_bounds = array<i64: 16, 96>}]} {
    %c0_i32 = arith.constant 0 : i32
    %0 = arith.cmpi eq, %arg2, %c0_i32 : i32
    %1 = arith.extui %0 : i1 to i32
    %c0_i32_0 = arith.constant 0 : i32
    %2 = arith.cmpi ne, %1, %c0_i32_0 : i32
    scf.if %2 {
      %cst_10 = arith.constant 0.000000e+00 : f32
      %14 = vector.broadcast %cst_10 : f32 to vector<16x96xf32>
      %c0_11 = arith.constant 0 : index
      %c0_12 = arith.constant 0 : index
      %15 = vector.load %arg7[%c0_11, %c0_12] : memref<16x96xf32, #tpu.memory_space<vmem>>, vector<16x96xf32>
      tpu.vector_store %arg7[%c0_11, %c0_12], %14 {strides = array<i32>} : memref<16x96xf32, #tpu.memory_space<vmem>>, vector<16x96xf32>,
    } else {
    }
    %c0 = arith.constant 0 : index
    %c0_1 = arith.constant 0 : index
    %3 = vector.load %arg7[%c0, %c0_1] : memref<16x96xf32, #tpu.memory_space<vmem>>, vector<16x96xf32>
    %c0_2 = arith.constant 0 : index
    %c0_3 = arith.constant 0 : index
    %4 = vector.load %arg3[%c0_2, %c0_3] : memref<16x32xf32, #tpu.memory_space<vmem>>, vector<16x32xf32>
    %5 = arith.truncf %4 : vector<16x32xf32> to vector<16x32xbf16>
    %c0_4 = arith.constant 0 : index
    %c0_5 = arith.constant 0 : index
    %6 = vector.load %arg4[%c0_4, %c0_5] : memref<32x96xf32, #tpu.memory_space<vmem>>, vector<32x96xf32>
    %7 = arith.truncf %6 : vector<32x96xf32> to vector<32x96xbf16>
    %cst = arith.constant dense<0.000000e+00> : vector<16x96xf32>
    %8 = tpu.matmul %5, %7, %cst {dimension_numbers = #tpu.dot_dimension_numbers<[1], [0], [0], [1], [0, 0, 1, 1], [], []>} : vector<16x32xbf16>, vector<32x96xbf16>, vector<16x96xf32> -> vector<16x96xf32>
    %9 = arith.addf %3, %8 : vector<16x96xf32>
    %c0_6 = arith.constant 0 : index
    %c0_7 = arith.constant 0 : index
    %10 = vector.load %arg7[%c0_6, %c0_7] : memref<16x96xf32, #tpu.memory_space<vmem>>, vector<16x96xf32>
    tpu.vector_store %arg7[%c0_6, %c0_7], %9 {strides = array<i32>} : memref<16x96xf32, #tpu.memory_space<vmem>>, vector<16x96xf32>,
    %c0_i32_8 = arith.constant 0 : i32
    %11 = arith.cmpi eq, %arg2, %c0_i32_8 : i32
    %12 = arith.extui %11 : i1 to i32
    %c0_i32_9 = arith.constant 0 : i32
    %13 = arith.cmpi ne, %12, %c0_i32_9 : i32
    scf.if %13 {
      %c0_10 = arith.constant 0 : index
      %c0_11 = arith.constant 0 : index
      %14 = vector.load %arg7[%c0_10, %c0_11] : memref<16x96xf32, #tpu.memory_space<vmem>>, vector<16x96xf32>
      %c0_12 = arith.constant 0 : index
      %c0_13 = arith.constant 0 : index
      %15 = vector.load %arg5[%c0_12, %c0_13] : memref<1x96xf32, #tpu.memory_space<vmem>>, vector<1x96xf32>
      %16 = vector.broadcast %15 : vector<1x96xf32> to vector<16x96xf32>
      %17 = arith.addf %14, %16 : vector<16x96xf32>
      %c0_14 = arith.constant 0 : index
      %c0_15 = arith.constant 0 : index
      %18 = vector.load %arg6[%c0_14, %c0_15] : memref<16x96xf32, #tpu.memory_space<vmem>>, vector<16x96xf32>
      tpu.vector_store %arg6[%c0_14, %c0_15], %17 {strides = array<i32>} : memref<16x96xf32, #tpu.memory_space<vmem>>, vector<16x96xf32>,
    } else {
    }
    return
  }
  func.func @transform_0(%arg0: i32, %arg1: i32, %arg2: i32) -> (i32, i32) {
    %c0_i32 = arith.constant 0 : i32
    return %arg0, %arg2 : i32, i32
  }
  func.func @transform_1(%arg0: i32, %arg1: i32, %arg2: i32) -> (i32, i32) {
    %c0_i32 = arith.constant 0 : i32
    return %arg2, %arg1 : i32, i32
  }
  func.func @transform_2(%arg0: i32, %arg1: i32, %arg2: i32) -> (i32, i32) {
    %c0_i32 = arith.constant 0 : i32
    %c0_i32_0 = arith.constant 0 : i32
    return %c0_i32, %arg1 : i32, i32
  }
  func.func @transform_3(%arg0: i32, %arg1: i32, %arg2: i32) -> (i32, i32) {
    %c0_i32 = arith.constant 0 : i32
    return %arg0, %arg1 : i32, i32
  }
}

</mosaic_0001>

<bundles_post_ra>
// kernel: tpu_custom_call.1
= control target key start
LH: loop header
LB: loop body
LE: loop exit
PB: predicated region body
PF: predicated region fallthrough
CT: control target
= control target key end

     0   :  { %8 = vsyncpa [#allocation4], 0  ;;  %s319_s0 = inlined_call_operand.hbm [shape: f32[16,32], index: 0, kind: input, shape index: {}]   ;;  %s320_s1 = inlined_call_operand.hbm [shape: f32[32,96], index: 1, kind: input, shape index: {}]   ;;  %s321_s2 = inlined_call_operand.vmem [shape: f32[1,96], index: 2, kind: input, shape index: {}]   ;;  %s322_s3 = inlined_call_operand.hbm [shape: f32[16,96], index: 3, kind: output, shape index: {}]  }
   0x1   :  { %9 = vsyncpa [#allocation7], 0 }
   0x2   :  { %10 = vsyncpa [#allocation5], 0  ;;  %s238_s12 = smov [#allocation3]   ;;  %s166_s16 = scalar_lea.hbm %s319_s0, 256 }
   0x3   :  { %s16_s13 = sshll.u32 %s238_s12, 4  ;;  %p167_p0 = scmp.ne.s32.totalorder %s319_s0, %s166_s16  ;;  %s17_s13 = int_to_ptr.vmem [resolvable:$true] %s16_s13 }
   0x4   :  { %p170_p1 = scmp.lt.u32.totalorder %s166_s16, %s319_s0 }
   0x6   :  { %p172_p2 = pnand %p170_p1, %p167_p0 }
   0x8   :  { %175 = shalt.err (!%p172_p2)
}
   0x9   :  { %s176_s21 = scalar_lea.vmem %s17_s13, 256  ;;  %p181_p4 = scmp.lt.s32.totalorder %s17_s13, %s17_s13 }
   0xa   :  { %p177_p3 = scmp.ne.s32.totalorder %s17_s13, %s176_s21  ;;  %p182_p5 = scmp.lt.s32.totalorder %s176_s21, %s176_s21 }
   0xc   :  { %p183_p6 = por %p182_p5, %p181_p4 }
   0xe   :  { %p184_p7 = pnand %p183_p6, %p177_p3 }
  0x10   :  { %187 = shalt.err (!%p184_p7)
}
  0x11   :  { %s239_s22 = smov 128   ;;  %s240_s23 = smov 8  }
  0x12   :  { %22 = dma.hbm_to_vmem [thread:$0]  %s319_s0, 256, %s17_s13, [#allocation4], %s239_s22, %s239_s22, %s240_s23  }
  0x13   :  { %s241_s26 = smov [#allocation6]   ;;  %s188_s30 = scalar_lea.hbm %s320_s1, 512 }
  0x14   :  { %s28_s27 = sshll.u32 %s241_s26, 4  ;;  %p189_p8 = scmp.ne.s32.totalorder %s320_s1, %s188_s30  ;;  %s29_s27 = int_to_ptr.vmem [resolvable:$true] %s28_s27 }
  0x15   :  { %p192_p9 = scmp.lt.u32.totalorder %s188_s30, %s320_s1 }
  0x17   :  { %p194_p10 = pnand %p192_p9, %p189_p8 }
  0x19   :  { %197 = shalt.err (!%p194_p10)
}
  0x1a   :  { %s198_s8 = scalar_lea.vmem %s29_s27, 512  ;;  %p203_p12 = scmp.lt.s32.totalorder %s29_s27, %s29_s27 }
  0x1b   :  { %p199_p11 = scmp.ne.s32.totalorder %s29_s27, %s198_s8  ;;  %p204_p13 = scmp.lt.s32.totalorder %s198_s8, %s198_s8 }
  0x1d   :  { %p205_p0 = por %p204_p13, %p203_p12 }
  0x1f   :  { %p206_p1 = pnand %p205_p0, %p199_p11 }
  0x21   :  { %209 = shalt.err (!%p206_p1)
}
  0x22   :  { %34 = dma.hbm_to_vmem [thread:$0]  %s320_s1, 512, %s29_s27, [#allocation7], %s239_s22, %s239_s22, %s240_s23  }
  0x23   :  { %232 = dma.done.wait [#allocation4], 256  }
  0x24   :  { %233 = vsyncadd [#allocation4], 4294967040 }
  0x25   :  { %234 = dma.done.wait [#allocation7], 512  }
  0x26   :  { %235 = vsyncadd [#allocation7], 4294966784  ;;  %vm48_vm0 = vcmask 785408   ;;  %v242_v0 = vmov 0.0   ;;  %vm243_vm1 = vmmov 0   ;;  %v56_v1 = vld [vmem:[#allocation6] sm:$0xff] }
  0x27   :  { %49 = vst.msk [vmem:[#allocation2] sm:$0xff] %vm48_vm0, %v242_v0  ;;  %50 = vst.msk [vmem:[#allocation2 + $0x8] sm:$0xff] %vm48_vm0, %v242_v0  ;;  %151 = vmatprep.subr.bf16.mxu0 %v242_v0  ;;  %155 = vmatprep.mubr.msk.bf16.mxu0 %vm243_vm1, %v242_v0  ;;  %v57_v2 = vld [vmem:[#allocation6 + $0x8] sm:$0xff]  ;;  %v58_v3 = vld [vmem:[#allocation6 + $0x10] sm:$0xff]  ;;  %vm62_vm2 = vcmask 261120   ;;  %s244_s11 = smov [#allocation8]  }
  0x28   :  { %v60_v4 = vpack.c.bf16 %v57_v2, %v56_v1  ;;  %v59_v5 = vld [vmem:[#allocation6 + $0x18] sm:$0xff]  ;;  %v53_v7 = vld [vmem:[#allocation3] sm:$0xff]  ;;  %v147_v18 = vld [vmem:[%s321_s2] ss:$0 sm:$0xff]  ;;  %s133_s12 = sshll.u32 %s244_s11, 4  ;;  %s134_s12 = int_to_ptr.vmem [resolvable:$true] %s133_s12 }
  0x29   :  { %v61_v6 = vpack.c.bf16 %v59_v5, %v58_v3  ;;  %v54_v8 = vld [vmem:[#allocation3 + $0x8] sm:$0xff]  ;;  %s210_s13 = scalar_lea.vmem %s134_s12, 256  ;;  %p215_p3 = scmp.lt.s32.totalorder %s134_s12, %s134_s12 }
  0x2a   :  { %152 = vmatpush3.bf16.msra.mxu0 %v60_v4  ;;  %v55_v9 = vpack.c.bf16 %v54_v8, %v53_v7  ;;  %p211_p2 = scmp.ne.s32.totalorder %s134_s12, %s210_s13  ;;  %p216_p4 = scmp.lt.s32.totalorder %s210_s13, %s210_s13 }
  0x2b   :  { %153 = vmatprep.subr.bf16.mxu0 %v242_v0 }
  0x2c   :  { %p217_p5 = por %p216_p4, %p215_p3 }
  0x2e   :  { %154 = vmatpush3.bf16.msra.mxu0 %v61_v6  ;;  %v51_v10 = vld [vmem:[#allocation2] sm:$0xff]  ;;  %v52_v12 = vld [vmem:[#allocation2 + $0x8] sm:$0xff]  ;;  %p218_p6 = pnand %p217_p5, %p211_p2 }
  0x31   :  { %156 = vmatmul.mubr.msk.bf16.vlgmr.msra.gmra.mrb[0].mxu0 %vm62_vm2, %v55_v9 }
 0x104   :  { %v100_v11 = vpop.f32.mrb[0].mxu0 }
 0x105   :  { %v107_v13 = vadd.f32 %v100_v11, %v51_v10  ;;  %v157_v14 = vpop.f32.mrb[1].mxu0 }
 0x106   :  { %v103_v15 = vpop.f32.mrb[2].mxu0 }
 0x107   :  { %110 = vst.msk [vmem:[#allocation2] sm:$0xff] %vm48_vm0, %v107_v13  ;;  %v108_v16 = vadd.f32 %v103_v15, %v52_v12  ;;  %v158_v17 = vpop.f32.mrb[3].mxu0 }
 0x109   :  { %111 = vst.msk [vmem:[#allocation2 + $0x8] sm:$0xff] %vm48_vm0, %v108_v16 }
 0x10e   :  { %v115_v19 = vld [vmem:[#allocation2] sm:$0xff] }
 0x10f   :  { %v124_v20 = vadd.f32 %v147_v18, %v115_v19 }
 0x110   :  { %v116_v21 = vld [vmem:[#allocation2 + $0x8] sm:$0xff] }
 0x111   :  { %v125_v22 = vadd.f32 %v147_v18, %v116_v21  ;;  %126 = vst.msk [vmem:[#allocation8] sm:$0xff] %vm48_vm0, %v124_v20 }
 0x113   :  { %127 = vst.msk [vmem:[#allocation8 + $0x8] sm:$0xff] %vm48_vm0, %v125_v22 }
 0x114   :  { %221 = shalt.err (!%p218_p6)
}
 0x115   :  { %s222_s15 = scalar_lea.hbm %s322_s3, 256 }
 0x116   :  { %p223_p7 = scmp.ne.s32.totalorder %s322_s3, %s222_s15  ;;  %p226_p8 = scmp.lt.u32.totalorder %s222_s15, %s322_s3 }
 0x118   :  { %p228_p9 = pnand %p226_p8, %p223_p7 }
 0x11a   :  { %231 = shalt.err (!%p228_p9)
}
 0x11b   :  { %139 = dma.vmem_to_hbm [thread:$0]  %s134_s12, 256, %s322_s3, [#allocation5], %s239_s22, %s239_s22, %s240_s23  }
 0x11c   :  { %236 = dma.done.wait [#allocation5], 256  }
 0x11d   :  { %237 = vsyncadd [#allocation5], 4294967040 }
 0x11e   :  { %143 = vsyncpa [#allocation4], 1 }
 0x11f   :  { %144 = vsyncpa [#allocation7], 1 }
 0x120   :  { %145 = vsyncpa [#allocation5], 1 }

</bundles_post_ra>
